<compile_context>
chip_gen: v5e
topology: v5e:2x2
jax: 0.10.0
libtpu: 0.0.40
codegen_flags: <defaults>
</compile_context>

<pallas_src>
import math
import numpy as np
import jax
import jax.numpy as jnp
from jax.experimental import pallas as pl
from jax.experimental.pallas import tpu as pltpu


def _round_up(x, m):
    return ((x + m - 1) // m) * m


def _src_coords(out_size, in_size):
    """PyTorch bilinear source coords (align_corners=False, recomputed per-dim scales)."""
    j = np.arange(out_size, dtype=np.float64)
    src = (j + 0.5) * (float(in_size) / float(out_size)) - 0.5
    src = np.maximum(src, 0.0)
    i0 = np.minimum(np.floor(src).astype(np.int64), in_size - 1)
    lam = (src - i0).astype(np.float32)
    i1 = np.minimum(i0 + 1, in_size - 1)
    return i0, i1, lam


def _interp_matrix(out_size, in_size, padded_out):
    """Dense (padded_out, in_size) bilinear matrix; rows >= out_size are zero (= zero pad)."""
    i0, i1, lam = _src_coords(out_size, in_size)
    w = np.zeros((padded_out, in_size), dtype=np.float32)
    rows = np.arange(out_size)
    w[rows, i0] += (1.0 - lam)
    w[rows, i1] += lam
    return w


def _pick_tile_hp(hp, cap):
    """Largest multiple-of-8 divisor of hp that is <= cap (hp is a multiple of 32)."""
    cap = max(32, min(int(cap), hp))
    best = 32
    for d in range(32, cap + 1, 8):
        if hp % d == 0:
            best = d
    return best


def _make_kernel(n_parts, bf16_matmul):
    def kernel(b0_ref, mean_ref, invstd_ref, hrow_ref, wcol_ref, *refs):
        del b0_ref                        # only used by the index maps
        xs = refs[:n_parts]               # each block: (1, 1, BK, W)
        whs = refs[n_parts:2 * n_parts]   # each block: (1, TILE_HP, BK)
        wwt_ref = refs[2 * n_parts]       # (W, Wp), grid-invariant, single-buffered
        o_ref = refs[2 * n_parts + 1]     # (1, 1, TILE_HP, Wp)
        c = pl.program_id(1)

        acc = None
        for p in range(n_parts):
            x = xs[p][0, 0]
            if bf16_matmul:
                x = x.astype(jnp.bfloat16)
            d = jnp.dot(whs[p][0], x, preferred_element_type=jnp.float32)
            acc = d if acc is None else acc + d
        if bf16_matmul:
            acc = acc.astype(jnp.bfloat16)
        out = jnp.dot(acc, wwt_ref[...], preferred_element_type=jnp.float32)

        # rank-1 normalization correction (hrow/wcol are zero on the padded rows/cols,
        # so the zero padding of batch_images() is preserved exactly).
        inv = invstd_ref[c]
        o_ref[0, 0] = out * inv - (mean_ref[c] * inv) * (hrow_ref[...] * wcol_ref[...])

    return kernel


def generalized_rcnn_transform(images, image_mean, image_std, min_size, max_size,
                               size_divisible=32, boxes=None,
                               max_tile_hp=256, bf16_matmul=False):
    """Returns (batched_images, image_sizes, resized_boxes)."""
    if not isinstance(min_size, (list, tuple)):
        min_size = (min_size,)
    N, C, H, W = images.shape

    # eval-mode resize(): size = min_size[-1]
    # TODO(synk): training-mode random torch_choice over min_size not reproduced.
    size = float(min_size[-1])
    min_s, max_s = float(min(H, W)), float(max(H, W))
    scale = size / min_s
    if max_s * scale > float(max_size):
        scale = float(max_size) / max_s
    Hout = int(math.floor(H * scale))
    Wout = int(math.floor(W * scale))
    Hp = _round_up(Hout, size_divisible)
    Wp = _round_up(Wout, size_divisible)

    TILE_HP = _pick_tile_hp(Hp, max_tile_hp)
    n_t = Hp // TILE_HP

    # ---- interpolation weights (per-dim recomputed scales -> matches interpolate()) ----
    wh = _interp_matrix(Hout, H, Hp)        # (Hp, H)
    ww = _interp_matrix(Wout, W, Wp)        # (Wp, W)
    hrow = wh.sum(axis=1).reshape(Hp, 1).astype(np.float32)
    wcol = ww.sum(axis=1).reshape(1, Wp).astype(np.float32)

    # ---- band-limited H contraction: per-tile input-row band ----
    i0h, i1h, _ = _src_coords(Hout, H)
    lo = np.zeros(n_t, np.int64)
    hi = np.zeros(n_t, np.int64)
    for t in range(n_t):
        r0, r1 = t * TILE_HP, min((t + 1) * TILE_HP, Hout)
        if r0 < r1:
            lo[t] = int(i0h[r0:r1].min())
            hi[t] = int(i1h[r0:r1].max())
    span = int((hi - lo).max()) + 1
    bk_band = max(8, _round_up(span, 8))
    h8 = _round_up(H, 8)
    use_band = (n_t > 1) and (2 * bk_band < h8)

    if use_band:
        n_parts = 2
        BK = bk_band
        nKb = -(-H // BK)                                   # ceil(H / BK)
        b0 = np.minimum(lo // BK, nKb - 1).astype(np.int32)
        assert (lo >= b0.astype(np.int64) * BK).all()
        assert (hi < (b0.astype(np.int64) + 2) * BK).all()  # band fits in 2 blocks
    else:
        n_parts = 1
        BK = h8
        nKb = 1
        b0 = np.zeros(n_t, np.int32)

    Hk = nKb * BK
    wh_pad = np.zeros((Hp, (nKb + 1) * BK), np.float32)
    wh_pad[:, :H] = wh
    wh_parts_np = []
    for part in range(n_parts):
        wh_parts_np.append(np.stack([
            wh_pad[t * TILE_HP:(t + 1) * TILE_HP,
                   (b0[t] + part) * BK:(b0[t] + part + 1) * BK]
            for t in range(n_t)]))                          # (n_t, TILE_HP, BK)
    wwt_np = np.ascontiguousarray(ww.T)                     # (W, Wp)

    w_dtype = jnp.bfloat16 if bf16_matmul else jnp.float32
    wh_parts = [jnp.asarray(a, w_dtype) for a in wh_parts_np]
    wwt = jnp.asarray(wwt_np, w_dtype)
    hrow_j = jnp.asarray(hrow)
    wcol_j = jnp.asarray(wcol)
    mean = jnp.asarray(image_mean, jnp.float32)
    invstd = 1.0 / jnp.asarray(image_std, jnp.float32)
    b0_j = jnp.asarray(b0)

    x = images.astype(jnp.float32)
    if Hk > H:
        x = jnp.pad(x, ((0, 0), (0, 0), (0, Hk - H), (0, 0)))

    # ---- BlockSpecs ----
    smem_spec = pl.BlockSpec(memory_space=pltpu.MemorySpace.SMEM)
    if use_band:
        x_specs = [
            pl.BlockSpec((1, 1, BK, W), lambda n, c, h, b0r: (n, c, b0r[h], 0)),
            pl.BlockSpec((1, 1, BK, W),
                         lambda n, c, h, b0r: (n, c, jnp.minimum(b0r[h] + 1, nKb - 1), 0)),
        ]
    else:
        x_specs = [pl.BlockSpec((1, 1, BK, W), lambda n, c, h, b0r: (n, c, 0, 0))]
    wh_specs = [pl.BlockSpec((1, TILE_HP, BK), lambda n, c, h, b0r: (h, 0, 0))
                for _ in range(n_parts)]
    in_specs = (
        [smem_spec,                                                        # mean (C,)
         smem_spec,                                                        # 1/std (C,)
         pl.BlockSpec((TILE_HP, 1), lambda n, c, h, b0r: (h, 0)),          # rowsum(Wh)
         pl.BlockSpec((1, Wp), lambda n, c, h, b0r: (0, 0),
                      pipeline_mode=pl.Buffered(1))]                       # rowsum(Ww)
        + x_specs + wh_specs
        + [pl.BlockSpec((W, Wp), lambda n, c, h, b0r: (0, 0),
                        pipeline_mode=pl.Buffered(1))]                     # Ww^T
    )
    out_spec = pl.BlockSpec((1, 1, TILE_HP, Wp), lambda n, c, h, b0r: (n, c, h, 0))

    # ---- explicit VMEM budget sized to the chosen blocks ----
    wsz = 2 if bf16_matmul else 4
    est = (4 * (2 * n_parts * BK * W                 # x blocks (double-buffered)
                + 2 * TILE_HP + Wp                   # hrow / wcol
                + 2 * TILE_HP * Wp                   # output blocks
                + TILE_HP * W + 2 * TILE_HP * Wp)    # intermediates headroom
           + wsz * (2 * n_parts * TILE_HP * BK       # wh blocks (double-buffered)
                    + W * Wp))                       # wwt (single-buffered)
    vmem_limit = int(min(64 * 2 ** 20, max(32 * 2 ** 20, 2 * est)))

    batched = pl.pallas_call(
        _make_kernel(n_parts, bf16_matmul),
        out_shape=jax.ShapeDtypeStruct((N, C, Hp, Wp), jnp.float32),
        grid_spec=pltpu.PrefetchScalarGridSpec(
            num_scalar_prefetch=1,
            grid=(N, C, n_t),
            in_specs=in_specs,
            out_specs=out_spec,
        ),
        compiler_params=pltpu.CompilerParams(
            dimension_semantics=("parallel", "parallel", "parallel"),
            vmem_limit_bytes=vmem_limit),
    )(b0_j, mean, invstd, hrow_j, wcol_j, *([x] * n_parts), *wh_parts, wwt)

    image_sizes = [(Hout, Wout)] * N
    # TODO(synk): torchvision resizes each image of a list independently; this fused batch
    # path assumes a uniform-size input batch (image_sizes replicated).

    resized_boxes = None
    if boxes is not None:
        rh = float(Hout) / float(H)
        rw = float(Wout) / float(W)
        xmin, ymin, xmax, ymax = boxes[:, 0], boxes[:, 1], boxes[:, 2], boxes[:, 3]
        resized_boxes = jnp.stack((xmin * rw, ymin * rh, xmax * rw, ymax * rh), axis=1)

    return batched, image_sizes, resized_boxes


def _reference(images, image_mean, image_std, Hout, Wout, Hp, Wp):
    """Pure-JAX dense reference of fused normalize + resize + zero-pad."""
    H, W = images.shape[-2:]
    wh = jnp.asarray(_interp_matrix(Hout, H, Hp))
    ww = jnp.asarray(_interp_matrix(Wout, W, Wp))
    mean = jnp.asarray(image_mean, jnp.float32)[None, :, None, None]
    std = jnp.asarray(image_std, jnp.float32)[None, :, None, None]
    xn = (images - mean) / std
    return jnp.einsum("ph,nchw,qw->ncpq", wh, xn, ww)


if __name__ == "__main__":
    key = jax.random.PRNGKey(0)
    image_mean = [0.485, 0.456, 0.406]
    image_std = [0.229, 0.224, 0.225]

    # ---- test 1: small shapes, single Hp tile (dense path) + box resize ----
    k1, k2, k3 = jax.random.split(key, 3)
    N, C, H, W = 2, 3, 16, 20
    images = jax.random.uniform(k1, (N, C, H, W), dtype=jnp.float32)
    boxes = jax.random.uniform(k2, (5, 4), dtype=jnp.float32) * 15.0
    out, sizes, out_boxes = generalized_rcnn_transform(
        images, image_mean, image_std, (24,), 48, boxes=boxes)
    out = jax.block_until_ready(out)
    Hout, Wout = sizes[0]
    assert out.shape == (N, C, 32, 32)
    ref = _reference(images, image_mean, image_std, Hout, Wout, 32, 32)
    assert float(jnp.max(jnp.abs(out - ref))) < 3e-4
    assert out_boxes.shape == (5, 4)

    # ---- test 2: forces multiple Hp tiles -> banded (scalar-prefetched) contraction ----
    images2 = jax.random.uniform(k3, (1, 3, 48, 40), dtype=jnp.float32)
    out2, sizes2, _ = generalized_rcnn_transform(
        images2, image_mean, image_std, (192,), 400, max_tile_hp=32)
    out2 = jax.block_until_ready(out2)
    Hout2, Wout2 = sizes2[0]
    Hp2, Wp2 = out2.shape[-2:]
    ref2 = _reference(images2, image_mean, image_std, Hout2, Wout2, Hp2, Wp2)
    assert float(jnp.max(jnp.abs(out2 - ref2))) < 3e-4

    print("KERNEL_OK")
</pallas_src>

<mosaic_0001>
module attributes {stable_mosaic.version = 11 : i64} {
  func.func @kernel(%arg0: i32, %arg1: i32, %arg2: i32, %arg3: memref<1xi32, #tpu.memory_space<smem>>, %arg4: memref<3xf32, #tpu.memory_space<smem>>, %arg5: memref<3xf32, #tpu.memory_space<smem>>, %arg6: memref<32x1xf32, #tpu.memory_space<vmem>>, %arg7: memref<1x32xf32, #tpu.memory_space<vmem>>, %arg8: memref<1x1x16x20xf32, #tpu.memory_space<vmem>>, %arg9: memref<1x32x16xf32, #tpu.memory_space<vmem>>, %arg10: memref<20x32xf32, #tpu.memory_space<vmem>>, %arg11: memref<1x1x32x32xf32, #tpu.memory_space<vmem>>) attributes {dimension_semantics = [#tpu.dimension_semantics<parallel>, #tpu.dimension_semantics<parallel>, #tpu.dimension_semantics<parallel>], iteration_bounds = array<i64: 2, 3, 1>, scalar_prefetch = 1 : i64, scratch_operands = 0 : i64, tpu.core_type = #tpu.core_type<tc>, window_params = [{transform_indices = @transform_0, window_bounds = array<i64: 3>}, {transform_indices = @transform_1, window_bounds = array<i64: 3>}, {transform_indices = @transform_2, window_bounds = array<i64: 32, 1>}, {pipeline_mode = #tpu.pipeline_mode<synchronous>, transform_indices = @transform_3, window_bounds = array<i64: 1, 32>}, {transform_indices = @transform_4, window_bounds = array<i64: 1, 1, 16, 20>}, {transform_indices = @transform_5, window_bounds = array<i64: 1, 32, 16>}, {pipeline_mode = #tpu.pipeline_mode<synchronous>, transform_indices = @transform_6, window_bounds = array<i64: 20, 32>}, {transform_indices = @transform_7, window_bounds = array<i64: 1, 1, 32, 32>}]} {
    %c0 = arith.constant 0 : index
    %c0_0 = arith.constant 0 : index
    %c0_1 = arith.constant 0 : index
    %c0_2 = arith.constant 0 : index
    %0 = vector.load %arg8[%c0, %c0_0, %c0_1, %c0_2] : memref<1x1x16x20xf32, #tpu.memory_space<vmem>>, vector<1x1x16x20xf32>
    %1 = vector.shape_cast %0 : vector<1x1x16x20xf32> to vector<16x20xf32>
    %c0_3 = arith.constant 0 : index
    %c0_4 = arith.constant 0 : index
    %c0_5 = arith.constant 0 : index
    %2 = vector.load %arg9[%c0_3, %c0_4, %c0_5] : memref<1x32x16xf32, #tpu.memory_space<vmem>>, vector<1x32x16xf32>
    %3 = vector.shape_cast %2 : vector<1x32x16xf32> to vector<32x16xf32>
    %cst = arith.constant dense<0.000000e+00> : vector<32x20xf32>
    %4 = tpu.matmul %3, %1, %cst {dimension_numbers = #tpu.dot_dimension_numbers<[1], [0], [0], [1], [0, 0, 1, 1], [], []>} : vector<32x16xf32>, vector<16x20xf32>, vector<32x20xf32> -> vector<32x20xf32>
    %c0_6 = arith.constant 0 : index
    %c0_7 = arith.constant 0 : index
    %5 = vector.load %arg10[%c0_6, %c0_7] : memref<20x32xf32, #tpu.memory_space<vmem>>, vector<20x32xf32>
    %cst_8 = arith.constant dense<0.000000e+00> : vector<32x32xf32>
    %6 = tpu.matmul %4, %5, %cst_8 {dimension_numbers = #tpu.dot_dimension_numbers<[1], [0], [0], [1], [0, 0, 1, 1], [], []>} : vector<32x20xf32>, vector<20x32xf32>, vector<32x32xf32> -> vector<32x32xf32>
    %7 = arith.index_cast %arg1 : i32 to index
    %8 = memref.load %arg5[%7] : memref<3xf32, #tpu.memory_space<smem>>
    %9 = vector.broadcast %8 : f32 to vector<32x32xf32>
    %10 = arith.mulf %6, %9 : vector<32x32xf32>
    %11 = arith.index_cast %arg1 : i32 to index
    %12 = memref.load %arg4[%11] : memref<3xf32, #tpu.memory_space<smem>>
    %13 = arith.mulf %12, %8 : f32
    %c0_9 = arith.constant 0 : index
    %c0_10 = arith.constant 0 : index
    %14 = vector.load %arg6[%c0_9, %c0_10] : memref<32x1xf32, #tpu.memory_space<vmem>>, vector<32x1xf32>
    %c0_11 = arith.constant 0 : index
    %c0_12 = arith.constant 0 : index
    %15 = vector.load %arg7[%c0_11, %c0_12] : memref<1x32xf32, #tpu.memory_space<vmem>>, vector<1x32xf32>
    %16 = vector.broadcast %14 : vector<32x1xf32> to vector<32x32xf32>
    %17 = vector.broadcast %15 : vector<1x32xf32> to vector<32x32xf32>
    %18 = arith.mulf %16, %17 : vector<32x32xf32>
    %19 = vector.broadcast %13 : f32 to vector<32x32xf32>
    %20 = arith.mulf %19, %18 : vector<32x32xf32>
    %21 = arith.subf %10, %20 : vector<32x32xf32>
    %c0_13 = arith.constant 0 : index
    %c0_14 = arith.constant 0 : index
    %c0_15 = arith.constant 0 : index
    %c0_16 = arith.constant 0 : index
    %22 = vector.load %arg11[%c0_13, %c0_14, %c0_15, %c0_16] : memref<1x1x32x32xf32, #tpu.memory_space<vmem>>, vector<1x1x32x32xf32>
    %23 = vector.shape_cast %22 : vector<1x1x32x32xf32> to vector<32x32xf32>
    %24 = vector.shape_cast %21 : vector<32x32xf32> to vector<1x1x32x32xf32>
    tpu.vector_store %arg11[%c0_13, %c0_14, %c0_15, %c0_16], %24 {strides = array<i32>} : memref<1x1x32x32xf32, #tpu.memory_space<vmem>>, vector<1x1x32x32xf32>,
    return
  }
  func.func @transform_0(%arg0: i32, %arg1: i32, %arg2: i32, %arg3: memref<1xi32, #tpu.memory_space<smem>>) -> i32 {
    %c0_i32 = arith.constant 0 : i32
    %c0_i32_0 = arith.constant 0 : i32
    return %c0_i32 : i32
  }
  func.func @transform_1(%arg0: i32, %arg1: i32, %arg2: i32, %arg3: memref<1xi32, #tpu.memory_space<smem>>) -> i32 {
    %c0_i32 = arith.constant 0 : i32
    %c0_i32_0 = arith.constant 0 : i32
    return %c0_i32 : i32
  }
  func.func @transform_2(%arg0: i32, %arg1: i32, %arg2: i32, %arg3: memref<1xi32, #tpu.memory_space<smem>>) -> (i32, i32) {
    %c0_i32 = arith.constant 0 : i32
    %c0_i32_0 = arith.constant 0 : i32
    return %arg2, %c0_i32 : i32, i32
  }
  func.func @transform_3(%arg0: i32, %arg1: i32, %arg2: i32, %arg3: memref<1xi32, #tpu.memory_space<smem>>) -> (i32, i32) {
    %c0_i32 = arith.constant 0 : i32
    %c0_i32_0 = arith.constant 0 : i32
    %c0_i32_1 = arith.constant 0 : i32
    return %c0_i32, %c0_i32_0 : i32, i32
  }
  func.func @transform_4(%arg0: i32, %arg1: i32, %arg2: i32, %arg3: memref<1xi32, #tpu.memory_space<smem>>) -> (i32, i32, i32, i32) {
    %c0_i32 = arith.constant 0 : i32
    %c0_i32_0 = arith.constant 0 : i32
    %c0_i32_1 = arith.constant 0 : i32
    return %arg0, %arg1, %c0_i32, %c0_i32_0 : i32, i32, i32, i32
  }
  func.func @transform_5(%arg0: i32, %arg1: i32, %arg2: i32, %arg3: memref<1xi32, #tpu.memory_space<smem>>) -> (i32, i32, i32) {
    %c0_i32 = arith.constant 0 : i32
    %c0_i32_0 = arith.constant 0 : i32
    %c0_i32_1 = arith.constant 0 : i32
    return %arg2, %c0_i32, %c0_i32_0 : i32, i32, i32
  }
  func.func @transform_6(%arg0: i32, %arg1: i32, %arg2: i32, %arg3: memref<1xi32, #tpu.memory_space<smem>>) -> (i32, i32) {
    %c0_i32 = arith.constant 0 : i32
    %c0_i32_0 = arith.constant 0 : i32
    %c0_i32_1 = arith.constant 0 : i32
    return %c0_i32, %c0_i32_0 : i32, i32
  }
  func.func @transform_7(%arg0: i32, %arg1: i32, %arg2: i32, %arg3: memref<1xi32, #tpu.memory_space<smem>>) -> (i32, i32, i32, i32) {
    %c0_i32 = arith.constant 0 : i32
    %c0_i32_0 = arith.constant 0 : i32
    return %arg0, %arg1, %arg2, %c0_i32 : i32, i32, i32, i32
  }
}

</mosaic_0001>

<bundles_post_ra>
// kernel: tpu_custom_call.1
= control target key start
LH: loop header
LB: loop body
LE: loop exit
PB: predicated region body
PF: predicated region fallthrough
CT: control target
= control target key end

     0   :  { %s1307_s0 = inlined_call_operand.<no memory space> [shape: s32[1], index: 0, kind: input, shape index: {}]   ;;  %s1308_s1 = inlined_call_operand.vmem [shape: f32[3], index: 1, kind: input, shape index: {}]   ;;  %s1309_s2 = inlined_call_operand.vmem [shape: f32[3], index: 2, kind: input, shape index: {}]   ;;  %s1310_s3 = inlined_call_operand.vmem [shape: f32[32,1], index: 3, kind: input, shape index: {}]   ;;  %s1311_s4 = inlined_call_operand.vmem [shape: f32[1,32], index: 4, kind: input, shape index: {}]   ;;  %s1312_s5 = inlined_call_operand.hbm [shape: f32[2,3,16,20], index: 5, kind: input, shape index: {}]   ;;  %s1313_s6 = inlined_call_operand.vmem [shape: f32[1,32,16], index: 6, kind: input, shape index: {}]   ;;  %s1314_s7 = inlined_call_operand.vmem [shape: f32[20,32], index: 7, kind: input, shape index: {}]   ;;  %s1315_s8 = inlined_call_operand.hbm [shape: f32[2,3,32,32], index: 8, kind: output, shape index: {}]  }
   0x1   :  { %1325 = sst [smem:[#allocation23_spill]] %s1308_s1 }
   0x2   :  { %1326 = sst [smem:[#allocation24_spill]] %s1309_s2 }
   0x3   :  { %1327 = sst [smem:[#allocation25_spill]] %s1311_s4 }
   0x4   :  { %1328 = sst [smem:[#allocation26_spill]] %s1315_s8 }
   0x5   :  { %14 = vsyncpa [#allocation7], 0 }
   0x6   :  { %15 = vsyncpa [#allocation9], 0 }
   0x7   :  { %16 = vsyncpa [#allocation5], 0 }
   0x8   :  { %18 = vsyncpa [#allocation5 + $0x1], 0 }
   0x9   :  { %19 = vsyncpa [#allocation6], 0 }
   0xa   :  { %21 = vsyncpa [#allocation6 + $0x1], 0  ;;  %s1080_s26 = smov 0   ;;  %s1082_s27 = smov 0  }
   0xb   :  { %s1084_s28 = smov 0   ;;  %s1086_s29 = smov 0  }
   0xc   :  { %s1088_s30 = smov 0   ;;  %s1090_s9 = smov 0  }
   0xd   :  { %s1092_s10 = smov 0   ;;  %s1094_s11 = smov 0  }
   0xe LB: > { %1329 = sst [smem:[#allocation16_spill]] %s998_s26  ;;  %s716_s12 = sadd.s32 4294967295, %s1026_s11   ;;  %s1026_s11 = sphi %s1094_s11, %s27_s11   ;;  %s1022_s10 = sphi %s1092_s10, %s1359_s10   ;;  %s1018_s9 = sphi %s1090_s9, %s1354_s9   ;;  %s1014_s30 = sphi %s1088_s30, %s1358_s30   ;;  %s1010_s29 = sphi %s1086_s29, %s1353_s29   ;;  %s1006_s28 = sphi %s1084_s28, %s1357_s28   ;;  %s1002_s27 = sphi %s1082_s27, %s1356_s27   ;;  %s998_s26 = sphi %s1080_s26, %s1355_s26  }
   0xf   : > { %1330 = sst [smem:[#allocation17_spill]] %s1014_s30  ;;  %s717_s13 = sadd.s32 4294967294, %s1026_s11  }
  0x10   : > { %1331 = sst [smem:[#allocation18_spill]] %s1018_s9  ;;  %p151_p0 = scmp.ne.s32.totalorder %s1006_s28, %s1002_s27 }
  0x11   : > { %1332 = sst [smem:[#allocation19_spill]] %s1026_s11  ;;  %p152_p1 = scmp.eq.s32.totalorder %s1026_s11, 0 }
  0x12   : > { %p157_p2 = scmp.ne.s32.totalorder %s1002_s27, %s998_s26  ;;  %p1128_p3 = scmp.eq.s32.totalorder %s716_s12, 0 }
  0x13   : > { %p232_p4 = scmp.eq.s32.totalorder %s716_s12, 5  ;;  %p1132_p5 = por %p152_p1, %p151_p0 }
  0x14   : > { %p238_p6 = scmp.eq.s32.totalorder %s717_s13, 5  ;;  %p1138_p7 = por %p1128_p3, %p157_p2 }
  0x15   : > { %p1142_p8 = por %p232_p4, %p151_p0  ;;  %p718_p10 = scmp.ge.s32.totalorder %s1026_s11, 1 }
  0x16   : > { %p1146_p9 = por %p238_p6, %p157_p2  ;;  %p245_p11 = scmp.lt.s32.totalorder %s1026_s11, 7 }
  0x17   : > { %s1336_s18 = scalar_select %p1142_p8, 1, 0 }
  0x18   : > { %s1338_s19 = scalar_select %p1146_p9, 1, 0 }
  0x19   : > { %1337 = sst [smem:[#allocation20_spill]] %s1336_s18  ;;  %p1155_p12 = pnand %p718_p10, %p245_p11 }
  0x1a   : > { %1339 = sst [smem:[#allocation21_spill]] %s1338_s19  ;;  %p782_p13 = scmp.lt.s32.totalorder %s1026_s11, 6 }
  0x1b   : > { %s1340_s1 = sld [smem:[#allocation23_spill]]  ;;  %p765_p0 = pneg %p1155_p12 }
  0x1c   : > { %s1342_s2 = sld [smem:[#allocation24_spill]]  ;;  %p1167_p1 = pnand %p782_p13, %p1132_p5 }
  0x1d   : > { %p766_p2 = pnand %p765_p0, %p1128_p3  ;;  %s1028_s13 = smov [#allocation4]  }
  0x1e   : > { %s1029_s20 = smov [#allocation8]   ;;  %s42_s21 = sadd.s32 1, %s1018_s9 }
  0x1f   : > { %s46_s14 = sadd.s32 1, %s1022_s10  ;;  %p44_p4 = scmp.ge.s32.totalorder %s42_s21, 3 }
  0x20   : > { %s301_s0 = sand.u32 1, %s1006_s28   ;;  %s1031_s4 = smov 8  }
  0x21   : > { %s257_s22 = sshll.u32 %s1340_s1, 4  ;;  %s724_s24 = sshll.u32 %s301_s0, 4  ;;  %s258_s22 = int_to_ptr.vmem [resolvable:$true] %s257_s22 }
  0x22   : > { %s267_s25 = sshll.u32 %s1342_s2, 4  ;;  %s1361_s21 = smov (%p44_p4, %s42_s21), 0  ;;  %s268_s25 = int_to_ptr.vmem [resolvable:$true] %s267_s25 }
  0x23   : > { %768 = dma.vmem_to_smem (!%p766_p2), %s258_s22, 16, %s1028_s13, [#allocation7]  }
  0x24   : > { %771 = dma.vmem_to_smem (!%p766_p2), %s268_s25, 16, %s1029_s20, [#allocation9]  }
  0x25   : > { %1344 = sst [smem:[#allocation22_spill]] %s1361_s21  ;;  %s1363_s14 = smov (!%p44_p4, %s46_s14), %s1022_s10 }
  0x26   : > { %s140_s16 = ssub.s32 %s1018_s9, %s1361_s21  ;;  %p48_p5 = scmp.ge.s32.totalorder %s1363_s14, 2 }
  0x27   : > { %s725_s1 = sshll.u32 %s1018_s9, 1  ;;  %s751_s2 = smul.u32 6, %s1022_s10 }
  0x28   : > { %s305_s19 = scalar_lea.vmem [#allocation10], %s724_s24  ;;  %s1365_s14 = smov (%p48_p5, %s1363_s14), 0 }
  0x29   : > { %s315_s22 = sshll.u32 %s305_s19, 4  ;;  %s310_s25 = sadd.s32 %s751_s2, %s725_s1  ;;  %s316_s22 = int_to_ptr.vmem [resolvable:$true] %s315_s22 }
  0x2a   : > { %s139_s13 = ssub.s32 %s1022_s10, %s1365_s14  ;;  %s726_s20 = sshll.u32 %s310_s25, 3 }
  0x2b   : > { %s141_s26 = sor.u32 %s140_s16, %s139_s13  ;;  %s312_s21 = scalar_lea.hbm %s1312_s5, %s726_s20 }
  0x2c   : > { %p142_p6 = scmp.eq.s32.totalorder %s141_s26, 0  ;;  %s313_s8 = sshll.u32 %s312_s21, 4  ;;  %s314_s8 = int_to_ptr.hbm [resolvable:$true] %s313_s8 }
  0x2d   : > { %s1345_s9 = sadd.s32 1, %s1006_s28  ;;  %s302_s24 = scalar_lea.sflag [#allocation5], %s301_s0 }
  0x2e   : > { %s1193_s30 = scalar_select %p142_p6, %s1006_s28, %s1345_s9  }
  0x2f   : > { %s1030_s19 = smov 128   ;;  %327 = sbr.rel (%p1155_p12) target bundleno = 353 (0x161), region = 48 }
  0x30   : > { %775 = dma.hbm_to_vmem [thread:$0]  (!%p1167_p1), %s314_s8, 256, %s316_s22, %s302_s24, %s1030_s19, %s1030_s19, %s1031_s4  }
  0x34   : > { %981 = dma.done.wait (%p1128_p3), [#allocation7], 16  }
  0x35   : > { %983 = vsyncadd (%p1128_p3), [#allocation7], 4294967280 }
  0x36   : > { %985 = dma.done.wait (%p1128_p3), [#allocation9], 16  }
  0x37   : > { %987 = vsyncadd (%p1128_p3), [#allocation9], 4294967280  ;;  %s1208_s1 = sand.u32 1, %s1002_s27  }
  0x38   : > { %s730_s2 = sshll.u32 %s1208_s1, 4  ;;  %s340_s4 = scalar_lea.sflag [#allocation5], %s1208_s1 }
  0x39   : > { %s343_s8 = scalar_lea.vmem [#allocation10], %s730_s2 }
  0x3a   : > { %989 = dma.done.wait (%p1138_p7), %s340_s4, 256  }
  0x3b   : > { %991 = vsyncadd (%p1138_p7), %s340_s4, 4294967040 }
  0x3c   : > { %349 = sfence }
  0x3d   : > { %v399_v0 = vld [vmem:[%s343_s8 + $0x8] sm:$0xff]  ;;  %v398_v1 = vld [vmem:[%s343_s8] sm:$0xff]  ;;  %vm404_vm0 = vcmask 130048   ;;  %vm462_vm1 = vcmask 1043456   ;;  %v1032_v9 = vmov 0   ;;  %vm449_vm2 = vcmask 162816  }
  0x3e   : > { %431 = vmatpush.msra.mxu0 %v399_v0  ;;  %746 = vmatpush.msra.mxu3 %v399_v0  ;;  %v400_v2 = vld [vmem:[%s1313_s6] sm:$0xff]  ;;  %v401_v3 = vld [vmem:[%s1313_s6 + $0x8] sm:$0xff]  ;;  %v448_v4 = vld [vmem:[%s1314_s7 + $0x10] sm:$0xf]  ;;  %s495_s11 = sld [smem:[#allocation8 + %s1010_s29]]  ;;  %s731_s0 = sshll.u32 %s1208_s1, 5 }
  0x3f   : > { %v447_v5 = vld [vmem:[%s1314_s7 + $0x8] sm:$0xff]  ;;  %736 = vmatpush.msk.msra.mxu1 %vm462_vm1, %v448_v4  ;;  %748 = vmatpush.msk.msra.mxu2 %vm462_vm1, %v448_v4  ;;  %v402_v6 = vld [vmem:[%s1313_s6 + $0x10] sm:$0xff]  ;;  %v403_v7 = vld [vmem:[%s1313_s6 + $0x18] sm:$0xff]  ;;  %s501_s15 = sld [smem:[#allocation4 + %s1010_s29]]  ;;  %vm544_vm3 = vcmask 261120   ;;  %s385_s16 = scalar_lea.vmem [#allocation11], %s731_s0 }
  0x40   : > { %432 = vmatpush.msra.mxu0 %v398_v1  ;;  %747 = vmatpush.msra.mxu3 %v398_v1  ;;  %v446_v8 = vld [vmem:[%s1314_s7] sm:$0xff]  ;;  %v504_v11 = vld [vmem:[%s1310_s3 + $0x8] sm:$0xff]  ;;  %v505_v12 = vld [vmem:[%s1310_s3 + $0x10] sm:$0xff]  ;;  %s1346_s17 = sld [smem:[#allocation25_spill]]  ;;  %s742_s25 = sshll.u32 %s1010_s29, 2 }
  0x41   : > { %732 = vmatmul.msk.f32.vlgmr.msra.gmra.mxu0 %vm404_vm0, %v400_v2  ;;  %733 = vmatmul.msk.f32.vlgmr.msra.gmra.mxu3 %vm404_vm0, %v401_v3  ;;  %v503_v10 = vld [vmem:[%s1310_s3] sm:$0xff]  ;;  %v506_v13 = vld [vmem:[%s1310_s3 + $0x18] sm:$0xff]  ;;  %s1347_s21 = sld [smem:[#allocation17_spill]]  ;;  %s566_s26 = sshll.u32 %s385_s16, 4  ;;  %s567_s26 = int_to_ptr.vmem [resolvable:$true] %s566_s26 }
  0x42   : > { %480 = vmatpush.msra.mxu1 %v447_v5  ;;  %749 = vmatpush.msra.mxu2 %v447_v5  ;;  %s1348_s2 = sld [smem:[#allocation26_spill]]  ;;  %s550_s29 = scalar_lea.sflag [#allocation6], %s1208_s1 }
  0x43   : > { %857 = vset.pattern.permute.xlu0 %v1032_v9  ;;  %858 = vset.pattern.permute.xlu1 %v1032_v9 }
  0x44   : > { %481 = vmatpush.msra.mxu1 %v446_v8  ;;  %750 = vmatpush.msra.mxu2 %v446_v8  ;;  %v496_v24 = vstv %s495_s11 }
  0x45   : > { %510 = vperm.xlu0 %857, %v503_v10   ;;  %520 = vperm.xlu1 %858, %v505_v12   ;;  %s502_s12 = smul.f32 %s501_s15, %s495_s11 }
  0x46   : > { %v859_v19 = vld [vmem:[%s1346_s17] ss:$0 sm:$0xff] }
  0x47   : > { %v535_v21 = vstv %s502_s12  ;;  %s752_s22 = smul.u32 12, %s1347_s21 }
  0x48   : > { %s940_s17 = scalar_lea.hbm %s1348_s2, 192 }
  0x49   : > { %734 = vmatmul.msk.f32.gmra.mxu3 %vm404_vm0, %v402_v6  ;;  %s563_s13 = sadd.s32 %s752_s22, %s742_s25 }
  0x4a   : > { %s743_s20 = sshll.u32 %s563_s13, 3 }
  0x4b   : > { %s565_s4 = scalar_lea.hbm %s1348_s2, %s743_s20 }
  0x4c   : > { %s568_s9 = sshll.u32 %s565_s4, 4  ;;  %s569_s9 = int_to_ptr.hbm [resolvable:$true] %s568_s9 }
  0x4d   : > { %515 = vperm.xlu0 %857, %v504_v11   ;;  %525 = vperm.xlu1 %858, %v506_v13   ;;  %s934_s11 = sshra.s32 %s569_s9, 4  ;;  %s935_s11 = int_to_ptr.hbm [resolvable:$true] %s934_s11 }
  0x4e   : > { %s936_s15 = scalar_lea.hbm %s935_s11, 32  ;;  %p941_p11 = scmp.lt.s32.totalorder %s935_s11, %s1348_s2 }
  0x4f   : > { %p937_p3 = scmp.ne.s32.totalorder %s935_s11, %s936_s15  ;;  %p942_p12 = scmp.lt.s32.totalorder %s940_s17, %s936_s15 }
  0x51   : > { %735 = vmatmul.msk.f32.gmra.mxu3 %vm404_vm0, %v403_v7  ;;  %p938_p7 = pnand %p937_p3, %p1142_p8  ;;  %p943_p13 = por %p942_p12, %p941_p11 }
  0x53   : > { %p939_p10 = pneg %p938_p7 }
  0x55   : > { %p944_p0 = pnand %p943_p13, %p939_p10 }
  0xb7   : > { %v511_v18 = vpop.permute.xlu0 %510  ;;  %v521_v33 = vpop.permute.xlu1 %520 }
  0xb8   : > { %v531_v20 = vmul.f32 %v859_v19, %v511_v18  ;;  %v533_v34 = vmul.f32 %v859_v19, %v521_v33 }
  0xba   : > { %v536_v22 = vmul.f32 %v535_v21, %v531_v20  ;;  %v538_v35 = vmul.f32 %v535_v21, %v533_v34 }
  0xbe   : > { %v434_v14 = vpop.f32.mrf.mxu0 }
  0xbf   : > { %737 = vmatmul.msk.f32.vlgmr.msra.gmra.mxu1 %vm449_vm2, %v434_v14  ;;  %v516_v25 = vpop.permute.xlu0 %515  ;;  %v526_v38 = vpop.permute.xlu1 %525 }
  0xc0   : > { %v532_v28 = vmul.f32 %v859_v19, %v516_v25  ;;  %v534_v40 = vmul.f32 %v859_v19, %v526_v38 }
  0xc2   : > { %v537_v29 = vmul.f32 %v535_v21, %v532_v28  ;;  %v539_v42 = vmul.f32 %v535_v21, %v534_v40 }
  0xc4   : > { %v437_v15 = vpop.f32.mrf.mxu3 }
  0xc7   : > { %738 = vmatmul.msk.f32.gmra.mxu1 %vm449_vm2, %v437_v15 }
  0xcc   : > { %v440_v16 = vpop.f32.mrf.mxu3 }
  0xcd   : > { %739 = vmatmul.msk.f32.vlgmr.msra.gmra.mxu2 %vm449_vm2, %v440_v16 }
  0xd4   : > { %v443_v17 = vpop.f32.mrf.mxu3 }
  0xd5   : > { %740 = vmatmul.msk.f32.gmra.mxu2 %vm449_vm2, %v443_v17 }
 0x13c   : > { %v483_v23 = vpop.f32.mrf.mxu1 }
 0x13d   : > { %v497_v26 = vmul.f32 %v496_v24, %v483_v23 }
 0x13f   : > { %v540_v27 = vsub.f32 %v497_v26, %v536_v22 }
 0x141   : > { %545 = vst.msk [vmem:[%s385_s16] sm:$0xff] %vm544_vm3, %v540_v27 }
 0x144   : > { %v486_v30 = vpop.f32.mrf.mxu1 }
 0x145   : > { %v498_v31 = vmul.f32 %v496_v24, %v486_v30 }
 0x147   : > { %v541_v32 = vsub.f32 %v498_v31, %v537_v29 }
 0x149   : > { %546 = vst.msk [vmem:[%s385_s16 + $0x8] sm:$0xff] %vm544_vm3, %v541_v32 }
 0x150   : > { %v489_v36 = vpop.f32.mrf.mxu2 }
 0x151   : > { %v499_v37 = vmul.f32 %v496_v24, %v489_v36 }
 0x153   : > { %v542_v39 = vsub.f32 %v499_v37, %v538_v35 }
 0x155   : > { %547 = vst.msk [vmem:[%s385_s16 + $0x10] sm:$0xff] %vm544_vm3, %v542_v39 }
 0x158   : > { %v492_v41 = vpop.f32.mrf.mxu2 }
 0x159   : > { %v500_v43 = vmul.f32 %v496_v24, %v492_v41 }
 0x15b   : > { %v543_v44 = vsub.f32 %v500_v43, %v539_v42 }
 0x15d   : > { %548 = vst.msk [vmem:[%s385_s16 + $0x18] sm:$0xff] %vm544_vm3, %v543_v44 }
 0x15e   : > { %947 = shalt.err (!%p944_p0)
}
 0x15f   : > { %s1033_s1 = smov 128   ;;  %s1034_s0 = smov 8  }
 0x160   : > { %763 = dma.vmem_to_hbm [thread:$0]  (%p1142_p8), %s567_s26, 512, %s569_s9, %s550_s29, %s1033_s1, %s1033_s1, %s1034_s0  }
 0x161 PF: > { %s1350_s16 = sld [smem:[#allocation19_spill]] }
 0x162   : > { %s1351_s22 = sld [smem:[#allocation16_spill]] }
 0x167   : > { %p785_p1 = scmp.ge.s32.totalorder %s1350_s16, 2 }
 0x168   : > { %s583_s13 = sand.u32 1, %s1351_s22  }
 0x169   : > { %p777_p2 = pnand %p785_p1, %p1146_p9  ;;  %s584_s20 = scalar_lea.sflag [#allocation6], %s583_s13 }
 0x16b   : > { %p778_p4 = pneg %p777_p2 }
 0x16d   : > { %993 = dma.done.wait (%p778_p4), %s584_s20, 512  }
 0x16e   : > { %995 = vsyncadd (%p778_p4), %s584_s20, 4294966784  ;;  %s27_s11 = sadd.s32 1, %s1350_s16   ;;  %s1353_s29 = sld [smem:[#allocation18_spill]] }
 0x16f   : > { %p24_p5 = scmp.ge.s32.totalorder %s27_s11, 8   ;;  %s1354_s9 = sld [smem:[#allocation22_spill]] }
 0x170   : > { %s1355_s26 = smov %s1002_s27  ;;  %s1356_s27 = smov %s1006_s28 }
 0x171   : > { %s1357_s28 = smov %s1193_s30  ;;  %s1358_s30 = smov %s1022_s10 }
 0x172   : > { %s1359_s10 = smov %s1365_s14  ;;  %26 = sbr.rel (!%p24_p5) target bundleno = 14 (0xe), region = 108 }
 0x177   :  { %590 = vsyncpa [#allocation5], 1 }
 0x178   :  { %592 = vsyncpa [#allocation5 + $0x1], 1 }
 0x179   :  { %593 = vsyncpa [#allocation6], 1 }
 0x17a   :  { %595 = vsyncpa [#allocation6 + $0x1], 1 }
 0x17b   :  { %596 = vsyncpa [#allocation7], 1 }
 0x17c   :  { %598 = vsyncpa [#allocation7 + $0x1], 1 }
 0x17d   :  { %599 = vsyncpa [#allocation9], 1 }

</bundles_post_ra>
